<compile_context>
chip_gen: v7x
topology: tpu7x:2x2x1
jax: 0.10.0
libtpu: 0.0.40
codegen_flags: <defaults>
</compile_context>

<pallas_src>
import functools

import jax
import jax.numpy as jnp
from jax.experimental import pallas as pl
from jax.experimental.pallas import tpu as pltpu


OUT_PAD = 128   # lane-dense width used for the final matmul / softmax compute
OUT_STORE = 8   # lanes actually written back to HBM (7 real classes + 1 pad)


def _mlp_kernel(x_ref, w1_ref, b1_ref, w2_ref, b2_ref, w3_ref, b3_ref, o_ref):
    # In-kernel bf16 cast of x (VPU work, hidden under the input DMA);
    # all matmuls accumulate in f32 on the MXU, elementwise math stays f32.
    x = x_ref[...].astype(jnp.bfloat16)

    # Layer 1: Linear + ReLU
    h = jnp.dot(x, w1_ref[...], preferred_element_type=jnp.float32)
    h = jnp.maximum(h + b1_ref[...], 0.0)

    # Layer 2: Linear + ReLU
    h = jnp.dot(h.astype(jnp.bfloat16), w2_ref[...],
                preferred_element_type=jnp.float32)
    h = jnp.maximum(h + b2_ref[...], 0.0)

    # Output layer: Linear + Softmax(dim=-1).
    # W3/b3 are padded to 128 lanes; pad lanes carry bias -1e30 so exp() -> 0
    # and they drop out of the max / sum.
    logits = jnp.dot(h.astype(jnp.bfloat16), w3_ref[...],
                     preferred_element_type=jnp.float32)
    logits = logits + b3_ref[...]
    m = jnp.max(logits, axis=-1, keepdims=True)
    e = jnp.exp(logits - m)
    denom = jnp.sum(e, axis=-1, keepdims=True)
    probs = e / denom  # exact divide: kernel is mem-bound, keeps row sums == 1

    # Narrow HBM writeback: only the first OUT_STORE lanes leave the chip.
    o_ref[...] = probs[:, : o_ref.shape[-1]].astype(o_ref.dtype)


def _tpu_vmem_bytes():
    try:
        return int(pltpu.get_tpu_info().vmem_capacity_bytes)
    except Exception:
        return 64 << 20  # conservative fallback (v7x per-TensorCore VMEM)


@functools.partial(jax.jit, static_argnames=("block_b",))
def dense_model_forward(x, w1, b1, w2, b2, w3, b3, *, block_b=None):
    B, F_in = x.shape
    H1 = w1.shape[1]
    H2 = w2.shape[1]
    OUT = w3.shape[1]

    # --- per-generation tiling / VMEM budget (trace-time, Python-level) -----
    vmem_cap = _tpu_vmem_bytes()
    if block_b is None:
        # 128-MiB-VMEM chips (v5e/v6e) take a bigger tile than v7x (64 MiB).
        block_b = 16384 if vmem_cap >= (128 << 20) else 8192
    vmem_limit = min(vmem_cap - (16 << 20), 96 << 20)  # headroom for scratch

    # Clamp tile to the batch, rounded to multiples of 16 (bf16 sublane pairs),
    # and force >= 2 grid blocks for large batches so v7x's two TensorCores
    # both get work (free on single-TC v5e/v6e).
    block_b = min(block_b, pl.cdiv(B, 16) * 16)
    if B > 32:
        block_b = min(block_b, pl.cdiv(pl.cdiv(B, 2), 16) * 16)
    block_b = max(16, pl.cdiv(block_b, 16) * 16)
    grid_b = pl.cdiv(B, block_b)
    b_pad = grid_b * block_b

    # --- wrapper-side layout plumbing (no extra HBM passes over x) ----------
    xp = x
    if b_pad != B:
        xp = jnp.pad(xp, ((0, b_pad - B), (0, 0)))          # zero rows, sliced off
    w1b = w1.astype(jnp.bfloat16)
    w2b = w2.astype(jnp.bfloat16)
    w3b = jnp.pad(w3, ((0, 0), (0, OUT_PAD - OUT))).astype(jnp.bfloat16)
    b1f = b1.astype(jnp.float32)
    b2f = b2.astype(jnp.float32)
    b3f = jnp.pad(b3.astype(jnp.float32), ((0, 0), (0, OUT_PAD - OUT)),
                  constant_values=-1e30)

    const = lambda shape: pl.BlockSpec(shape, lambda i: (0, 0))  # resident operand

    cost = pl.CostEstimate(
        flops=2 * b_pad * (F_in * H1 + H1 * H2 + H2 * OUT_PAD),
        transcendentals=b_pad * OUT_PAD,
        bytes_accessed=b_pad * (F_in * 4 + OUT_STORE * 4)
        + 2 * (F_in * H1 + H1 * H2 + H2 * OUT_PAD)
        + 4 * (H1 + H2 + OUT_PAD),
    )

    out = pl.pallas_call(
        _mlp_kernel,
        out_shape=jax.ShapeDtypeStruct((b_pad, OUT_STORE), jnp.float32),
        grid_spec=pltpu.PrefetchScalarGridSpec(
            num_scalar_prefetch=0,
            grid=(grid_b,),
            in_specs=[
                pl.BlockSpec((block_b, F_in), lambda i: (i, 0)),  # x tile (f32)
                const((F_in, H1)),     # W1 (bf16)
                const((1, H1)),        # b1 (f32)
                const((H1, H2)),       # W2 (bf16)
                const((1, H2)),        # b2 (f32)
                const((H2, OUT_PAD)),  # W3 padded (bf16)
                const((1, OUT_PAD)),   # b3 padded (f32, -1e30 on pad lanes)
            ],
            out_specs=pl.BlockSpec((block_b, OUT_STORE), lambda i: (i, 0)),
        ),
        compiler_params=pltpu.CompilerParams(
            dimension_semantics=("parallel",),
            vmem_limit_bytes=vmem_limit,
        ),
        cost_estimate=cost,
    )(xp, w1b, b1f, w2b, b2f, w3b, b3f)

    return out[:B, :OUT]


def _reference_f32(x, w1, b1, w2, b2, w3, b3):
    h = jnp.maximum(x @ w1 + b1, 0.0)
    h = jnp.maximum(h @ w2 + b2, 0.0)
    return jax.nn.softmax(h @ w3 + b3, axis=-1)


def _reference_bf16(x, w1, b1, w2, b2, w3, b3):
    # Same precision recipe as the kernel: bf16 MXU inputs, f32 accumulate/elementwise.
    dot = lambda a, b: jnp.dot(a.astype(jnp.bfloat16), b.astype(jnp.bfloat16),
                               preferred_element_type=jnp.float32)
    h = jnp.maximum(dot(x, w1) + b1, 0.0)
    h = jnp.maximum(dot(h, w2) + b2, 0.0)
    return jax.nn.softmax(dot(h, w3) + b3, axis=-1)


def _init_linear(key, fan_in, fan_out):
    # Deterministic init mimicking torch.nn.Linear default (uniform(-k, k), k=1/sqrt(fan_in)).
    k = 1.0 / jnp.sqrt(jnp.float32(fan_in))
    kw, kb = jax.random.split(key)
    w = jax.random.uniform(kw, (fan_in, fan_out), jnp.float32, -k, k)
    b = jax.random.uniform(kb, (1, fan_out), jnp.float32, -k, k)
    return w, b


if __name__ == "__main__":
    # Model config: input_shape=32, dense_neurons=(64, 32), activations=('relu','relu'),
    # dropout=None, output_neurons=7, activation_function_for_output='softmax'.
    INPUT_SHAPE = 32
    DENSE_NEURONS = (64, 32)
    OUTPUT_NEURONS = 7
    BATCH = 8

    key = jax.random.PRNGKey(0)
    kx, k1, k2, k3 = jax.random.split(key, 4)

    x = jax.random.normal(kx, (BATCH, INPUT_SHAPE), jnp.float32)
    w1, b1 = _init_linear(k1, INPUT_SHAPE, DENSE_NEURONS[0])
    w2, b2 = _init_linear(k2, DENSE_NEURONS[0], DENSE_NEURONS[1])
    w3, b3 = _init_linear(k3, DENSE_NEURONS[1], OUTPUT_NEURONS)

    out = dense_model_forward(x, w1, b1, w2, b2, w3, b3)
    out = jax.block_until_ready(out)
    assert out.shape == (BATCH, OUTPUT_NEURONS)

    ref_bf16 = _reference_bf16(x, w1, b1, w2, b2, w3, b3)
    ref_f32 = _reference_f32(x, w1, b1, w2, b2, w3, b3)
    assert jnp.allclose(out, ref_bf16, atol=2e-3, rtol=2e-3), "mismatch vs matched-precision reference"
    assert jnp.allclose(out, ref_f32, atol=3e-2, rtol=3e-2), "mismatch vs f32 reference"
    assert jnp.allclose(jnp.sum(out, axis=-1), 1.0, atol=1e-4), "softmax rows must sum to 1"

    print("KERNEL_OK")
</pallas_src>

<mosaic_0001>
module attributes {stable_mosaic.version = 11 : i64} {
  func.func @_mlp_kernel(%arg0: i32, %arg1: memref<16x32xf32, #tpu.memory_space<vmem>>, %arg2: memref<32x64xbf16, #tpu.memory_space<vmem>>, %arg3: memref<1x64xf32, #tpu.memory_space<vmem>>, %arg4: memref<64x32xbf16, #tpu.memory_space<vmem>>, %arg5: memref<1x32xf32, #tpu.memory_space<vmem>>, %arg6: memref<32x128xbf16, #tpu.memory_space<vmem>>, %arg7: memref<1x128xf32, #tpu.memory_space<vmem>>, %arg8: memref<16x8xf32, #tpu.memory_space<vmem>>) attributes {dimension_semantics = [#tpu.dimension_semantics<parallel>], iteration_bounds = array<i64: 1>, scalar_prefetch = 0 : i64, scratch_operands = 0 : i64, tpu.core_type = #tpu.core_type<tc>, window_params = [{transform_indices = @transform_0, window_bounds = array<i64: 16, 32>}, {pipeline_mode = #tpu.pipeline_mode<synchronous>, transform_indices = @transform_1, window_bounds = array<i64: 32, 64>}, {pipeline_mode = #tpu.pipeline_mode<synchronous>, transform_indices = @transform_2, window_bounds = array<i64: 1, 64>}, {pipeline_mode = #tpu.pipeline_mode<synchronous>, transform_indices = @transform_3, window_bounds = array<i64: 64, 32>}, {pipeline_mode = #tpu.pipeline_mode<synchronous>, transform_indices = @transform_4, window_bounds = array<i64: 1, 32>}, {pipeline_mode = #tpu.pipeline_mode<synchronous>, transform_indices = @transform_5, window_bounds = array<i64: 32, 128>}, {pipeline_mode = #tpu.pipeline_mode<synchronous>, transform_indices = @transform_6, window_bounds = array<i64: 1, 128>}, {transform_indices = @transform_7, window_bounds = array<i64: 16, 8>}]} {
    %c0 = arith.constant 0 : index
    %c0_0 = arith.constant 0 : index
    %0 = vector.load %arg1[%c0, %c0_0] : memref<16x32xf32, #tpu.memory_space<vmem>>, vector<16x32xf32>
    %1 = arith.truncf %0 : vector<16x32xf32> to vector<16x32xbf16>
    %c0_1 = arith.constant 0 : index
    %c0_2 = arith.constant 0 : index
    %2 = vector.load %arg2[%c0_1, %c0_2] : memref<32x64xbf16, #tpu.memory_space<vmem>>, vector<32x64xbf16>
    %cst = arith.constant dense<0.000000e+00> : vector<16x64xf32>
    %3 = tpu.matmul %1, %2, %cst {dimension_numbers = #tpu.dot_dimension_numbers<[1], [0], [0], [1], [0, 0, 1, 1], [], []>} : vector<16x32xbf16>, vector<32x64xbf16>, vector<16x64xf32> -> vector<16x64xf32>
    %c0_3 = arith.constant 0 : index
    %c0_4 = arith.constant 0 : index
    %4 = vector.load %arg3[%c0_3, %c0_4] : memref<1x64xf32, #tpu.memory_space<vmem>>, vector<1x64xf32>
    %5 = vector.broadcast %4 : vector<1x64xf32> to vector<16x64xf32>
    %6 = arith.addf %3, %5 : vector<16x64xf32>
    %cst_5 = arith.constant 0.000000e+00 : f32
    %7 = vector.broadcast %cst_5 : f32 to vector<16x64xf32>
    %8 = arith.maximumf %6, %7 : vector<16x64xf32>
    %9 = arith.truncf %8 : vector<16x64xf32> to vector<16x64xbf16>
    %c0_6 = arith.constant 0 : index
    %c0_7 = arith.constant 0 : index
    %10 = vector.load %arg4[%c0_6, %c0_7] : memref<64x32xbf16, #tpu.memory_space<vmem>>, vector<64x32xbf16>
    %cst_8 = arith.constant dense<0.000000e+00> : vector<16x32xf32>
    %11 = tpu.matmul %9, %10, %cst_8 {dimension_numbers = #tpu.dot_dimension_numbers<[1], [0], [0], [1], [0, 0, 1, 1], [], []>} : vector<16x64xbf16>, vector<64x32xbf16>, vector<16x32xf32> -> vector<16x32xf32>
    %c0_9 = arith.constant 0 : index
    %c0_10 = arith.constant 0 : index
    %12 = vector.load %arg5[%c0_9, %c0_10] : memref<1x32xf32, #tpu.memory_space<vmem>>, vector<1x32xf32>
    %13 = vector.broadcast %12 : vector<1x32xf32> to vector<16x32xf32>
    %14 = arith.addf %11, %13 : vector<16x32xf32>
    %cst_11 = arith.constant 0.000000e+00 : f32
    %15 = vector.broadcast %cst_11 : f32 to vector<16x32xf32>
    %16 = arith.maximumf %14, %15 : vector<16x32xf32>
    %17 = arith.truncf %16 : vector<16x32xf32> to vector<16x32xbf16>
    %c0_12 = arith.constant 0 : index
    %c0_13 = arith.constant 0 : index
    %18 = vector.load %arg6[%c0_12, %c0_13] : memref<32x128xbf16, #tpu.memory_space<vmem>>, vector<32x128xbf16>
    %cst_14 = arith.constant dense<0.000000e+00> : vector<16x128xf32>
    %19 = tpu.matmul %17, %18, %cst_14 {dimension_numbers = #tpu.dot_dimension_numbers<[1], [0], [0], [1], [0, 0, 1, 1], [], []>} : vector<16x32xbf16>, vector<32x128xbf16>, vector<16x128xf32> -> vector<16x128xf32>
    %c0_15 = arith.constant 0 : index
    %c0_16 = arith.constant 0 : index
    %20 = vector.load %arg7[%c0_15, %c0_16] : memref<1x128xf32, #tpu.memory_space<vmem>>, vector<1x128xf32>
    %21 = vector.broadcast %20 : vector<1x128xf32> to vector<16x128xf32>
    %22 = arith.addf %19, %21 : vector<16x128xf32>
    %cst_17 = arith.constant dense<0xFF800000> : vector<16xf32>
    %23 = vector.multi_reduction <maximumf>, %22, %cst_17 [1] : vector<16x128xf32> to vector<16xf32>
    %24 = vector.shape_cast %23 : vector<16xf32> to vector<16x1xf32>
    %25 = vector.broadcast %24 : vector<16x1xf32> to vector<16x128xf32>
    %26 = arith.subf %22, %25 : vector<16x128xf32>
    %27 = math.exp %26 : vector<16x128xf32>
    %cst_18 = arith.constant dense<0.000000e+00> : vector<16xf32>
    %28 = vector.multi_reduction <add>, %27, %cst_18 [1] : vector<16x128xf32> to vector<16xf32>
    %29 = vector.shape_cast %28 : vector<16xf32> to vector<16x1xf32>
    %30 = vector.broadcast %29 : vector<16x1xf32> to vector<16x128xf32>
    %31 = arith.divf %27, %30 : vector<16x128xf32>
    %32 = vector.extract_strided_slice %31 {offsets = [0, 0], sizes = [16, 8], strides = [1, 1]} : vector<16x128xf32> to vector<16x8xf32>
    %c0_19 = arith.constant 0 : index
    %c0_20 = arith.constant 0 : index
    %33 = vector.load %arg8[%c0_19, %c0_20] : memref<16x8xf32, #tpu.memory_space<vmem>>, vector<16x8xf32>
    tpu.vector_store %arg8[%c0_19, %c0_20], %32 {strides = array<i32>} : memref<16x8xf32, #tpu.memory_space<vmem>>, vector<16x8xf32>,
    return
  }
  func.func @transform_0(%arg0: i32) -> (i32, i32) {
    %c0_i32 = arith.constant 0 : i32
    %c0_i32_0 = arith.constant 0 : i32
    return %arg0, %c0_i32 : i32, i32
  }
  func.func @transform_1(%arg0: i32) -> (i32, i32) {
    %c0_i32 = arith.constant 0 : i32
    %c0_i32_0 = arith.constant 0 : i32
    %c0_i32_1 = arith.constant 0 : i32
    return %c0_i32, %c0_i32_0 : i32, i32
  }
  func.func @transform_2(%arg0: i32) -> (i32, i32) {
    %c0_i32 = arith.constant 0 : i32
    %c0_i32_0 = arith.constant 0 : i32
    %c0_i32_1 = arith.constant 0 : i32
    return %c0_i32, %c0_i32_0 : i32, i32
  }
  func.func @transform_3(%arg0: i32) -> (i32, i32) {
    %c0_i32 = arith.constant 0 : i32
    %c0_i32_0 = arith.constant 0 : i32
    %c0_i32_1 = arith.constant 0 : i32
    return %c0_i32, %c0_i32_0 : i32, i32
  }
  func.func @transform_4(%arg0: i32) -> (i32, i32) {
    %c0_i32 = arith.constant 0 : i32
    %c0_i32_0 = arith.constant 0 : i32
    %c0_i32_1 = arith.constant 0 : i32
    return %c0_i32, %c0_i32_0 : i32, i32
  }
  func.func @transform_5(%arg0: i32) -> (i32, i32) {
    %c0_i32 = arith.constant 0 : i32
    %c0_i32_0 = arith.constant 0 : i32
    %c0_i32_1 = arith.constant 0 : i32
    return %c0_i32, %c0_i32_0 : i32, i32
  }
  func.func @transform_6(%arg0: i32) -> (i32, i32) {
    %c0_i32 = arith.constant 0 : i32
    %c0_i32_0 = arith.constant 0 : i32
    %c0_i32_1 = arith.constant 0 : i32
    return %c0_i32, %c0_i32_0 : i32, i32
  }
  func.func @transform_7(%arg0: i32) -> (i32, i32) {
    %c0_i32 = arith.constant 0 : i32
    %c0_i32_0 = arith.constant 0 : i32
    return %arg0, %c0_i32 : i32, i32
  }
}

</mosaic_0001>

<bundles_post_ra>
// kernel: dense_model_forward.1
= control target key start
LH: loop header
LB: loop body
LE: loop exit
PB: predicated region body
PF: predicated region fallthrough
CT: control target
= control target key end

     0   :  { %v351_v0 = vmov 0.0   ;;  %vm352_vm0 = vmmov 0   ;;  %vm53_vm1 = vcmask 261120   ;;  %vm140_vm2 = vcmask 523264   ;;  %s443_s1 = inlined_call_operand.vmem [shape: bf16[32,64], index: 1, kind: input, shape index: {}]   ;;  %s444_s0 = inlined_call_operand.vmem [shape: f32[16,32], index: 0, kind: input, shape index: {}]   ;;  %s445_s3 = inlined_call_operand.vmem [shape: bf16[64,32], index: 3, kind: input, shape index: {}]   ;;  %s446_s2 = inlined_call_operand.vmem [shape: f32[1,64], index: 2, kind: input, shape index: {}]   ;;  %s447_s5 = inlined_call_operand.vmem [shape: bf16[32,128], index: 5, kind: input, shape index: {}]   ;;  %s448_s4 = inlined_call_operand.vmem [shape: f32[1,32], index: 4, kind: input, shape index: {}]   ;;  %s449_s6 = inlined_call_operand.vmem [shape: f32[1,128], index: 6, kind: input, shape index: {}]   ;;  %s450_s7 = inlined_call_operand.vmem [shape: f32[16,8], index: 7, kind: output, shape index: {}]  }
   0x1   :  { %305 = vmatprep.subr.bf16.mxu0 %v351_v0  ;;  %v335_v1 = vld [vmem:[%s443_s1] sm:$0xff]   ;;  %309 = vmatprep.mubr.msk.bf16.mxu0 %vm352_vm0, %v351_v0  ;;  %v336_v2 = vld [vmem:[%s443_s1 + $0x8] sm:$0xff]   ;;  %v339_v8 = vld [vmem:[%s445_s3 + $0x10] sm:$0xff]   ;;  %vm273_vm3 = vcmask 64512  }
   0x2   :  { %313 = vmatprep.subr.bf16.mxu1 %v351_v0  ;;  %321 = vmatprep.mubr.msk.bf16.mxu1 %vm352_vm0, %v351_v0  ;;  %v27_v3 = vld [vmem:[%s444_s0] sm:$0xff]  ;;  %v28_v4 = vld [vmem:[%s444_s0 + $0x8] sm:$0xff]  ;;  %v340_v9 = vld [vmem:[%s445_s3 + $0x18] sm:$0xff]  }
   0x3   :  { %306 = vmatpush3.bf16.msra.mxu0 %v335_v1  ;;  %v337_v5 = vld [vmem:[%s445_s3] sm:$0xff]   ;;  %v338_v6 = vld [vmem:[%s445_s3 + $0x8] sm:$0xff]   ;;  %v29_v7 = vpack.c.bf16 %v28_v4, %v27_v3 }
   0x4   :  { %307 = vmatprep.subr.bf16.mxu0 %v351_v0  ;;  %314 = vmatpush3.bf16.msra.mxu1 %v337_v5  ;;  %v280_v10 = vld [vmem:[%s446_s2] ss:$0 sm:$0xff]  ;;  %v342_v21 = vld [vmem:[%s447_s5 + $0x8] sm:$0xff]  }
   0x5   :  { %315 = vmatprep.subr.bf16.mxu1 %v351_v0  ;;  %v341_v20 = vld [vmem:[%s447_s5] sm:$0xff]  }
   0x6   :  { %v284_v22 = vld [vmem:[%s448_s4] ss:$0 sm:$0xff] }
   0x7   :  { %308 = vmatpush3.bf16.msra.mxu0 %v336_v2  ;;  %v290_v32 = vld [vmem:[%s449_s6] ss:$0 sm:$0xff] }
   0x8   :  { %325 = vmatprep.subr.bf16.mxu0 %v351_v0  ;;  %316 = vmatpush3.bf16.msra.mxu1 %v338_v6 }
   0x9   :  { %317 = vmatprep.subr.bf16.mxu1 %v351_v0 }
   0xa   :  { %310 = vmatmul.mubr.msk.bf16.vlgmr.msra.gmra.mrb[0].mxu0 %vm53_vm1, %v29_v7 }
   0xb   :  { %329 = vmatprep.mubr.msk.bf16.mxu0 %vm352_vm0, %v351_v0  ;;  %326 = vmatpush3.bf16.msra.mxu0 %v341_v20 }
   0xc   :  { %318 = vmatpush3.bf16.msra.mxu1 %v339_v8  ;;  %327 = vmatprep.subr.bf16.mxu0 %v351_v0 }
   0xd   :  { %319 = vmatprep.subr.bf16.mxu1 %v351_v0 }
   0xf   :  { %328 = vmatpush3.bf16.msra.mxu0 %v342_v21 }
  0x10   :  { %320 = vmatpush3.bf16.msra.mxu1 %v340_v9 }
  0xdd   :  { %v91_v11 = vpop.f32.mrb[0].mxu0 }
  0xde   :  { %v92_v12 = vadd.f32 %v280_v10, %v91_v11  ;;  %v311_v13 = vpop.f32.mrb[1].mxu0 }
  0xdf   :  { %v94_v14 = vpop.f32.mrb[2].mxu0 }
  0xe0   :  { %v95_v15 = vadd.f32 %v280_v10, %v94_v14  ;;  %v312_v16 = vpop.f32.mrb[3].mxu0  ;;  %v98_v17 = vmax.f32 %v92_v12, 0.0 }
  0xe2   :  { %v99_v18 = vmax.f32 %v95_v15, 0.0 }
  0xe4   :  { %v100_v19 = vpack.c.bf16 %v99_v18, %v98_v17 }
  0xe6   :  { %322 = vmatmul.mubr.msk.bf16.vlgmr.msra.gmra.mrb[0].mxu1 %vm140_vm2, %v100_v19 }
 0x1b9   :  { %v178_v23 = vpop.f32.mrb[0].mxu1 }
 0x1ba   :  { %v179_v24 = vadd.f32 %v284_v22, %v178_v23  ;;  %v323_v25 = vpop.f32.mrb[1].mxu1 }
 0x1bb   :  { %v181_v26 = vpop.f32.mrb[2].mxu1 }
 0x1bc   :  { %v182_v27 = vadd.f32 %v284_v22, %v181_v26  ;;  %v324_v28 = vpop.f32.mrb[3].mxu1  ;;  %v185_v29 = vmax.f32 %v179_v24, 0.0 }
 0x1be   :  { %v186_v30 = vmax.f32 %v182_v27, 0.0 }
 0x1c0   :  { %v187_v31 = vpack.c.bf16 %v186_v30, %v185_v29 }
 0x1c2   :  { %330 = vmatmul.mubr.msk.bf16.vlgmr.msra.gmra.mrb[4].mxu0 %vm53_vm1, %v187_v31 }
 0x295   :  { %v248_v33 = vpop.f32.mrb[4].mxu0 }
 0x296   :  { %v249_v34 = vadd.f32 %v290_v32, %v248_v33  ;;  %v331_v35 = vpop.f32.mrb[5].mxu0 }
 0x297   :  { %v251_v36 = vpop.f32.mrb[6].mxu0 }
 0x298   :  { %255 = vmax.xlane.f32.xlu0 %v249_v34  ;;  %v332_v37 = vpop.f32.mrb[7].mxu0  ;;  %v252_v38 = vadd.f32 %v290_v32, %v251_v36 }
 0x29c   :  { %257 = vmax.xlane.f32.xlu0 %v252_v38 }
 0x325   :  { %v256_v39 = vpop.xlane.xlu0 %255 }
 0x326   :  { %v259_v40 = vsub.f32 %v249_v34, %v256_v39 }
 0x328   :  { %v261_v41 = vmul.f32 1.442695, %v259_v40 }
 0x329   :  { %v258_v42 = vpop.xlane.xlu0 %257 }
 0x32a   :  { %343 = vpow2.f32 %v261_v41  ;;  %v260_v43 = vsub.f32 %v252_v38, %v258_v42 }
 0x32c   :  { %v263_v44 = vmul.f32 1.442695, %v260_v43 }
 0x32e   :  { %345 = vpow2.f32 %v263_v44 }
 0x334   :  { %v344_v45 = vpop.eup %343 }
 0x335   :  { %265 = vadd.xlane.f32.xlu1 %v344_v45 }
 0x338   :  { %v346_v46 = vpop.eup %345 }
 0x339   :  { %267 = vadd.xlane.f32.xlu1 %v346_v46 }
 0x3c2   :  { %v266_v47 = vpop.xlane.xlu1 %265 }
 0x3c3   :  { %347 = vrcp.f32 %v266_v47 }
 0x3c6   :  { %v268_v48 = vpop.xlane.xlu1 %267 }
 0x3c7   :  { %349 = vrcp.f32 %v268_v48 }
 0x3cd   :  { %v348_v49 = vpop.eup %347 }
 0x3ce   :  { %v270_v50 = vmul.f32 %v348_v49, %v344_v45 }
 0x3d0   :  { %274 = vst.msk [vmem:[%s450_s7] sm:$0xff] %vm273_vm3, %v270_v50 }
 0x3d1   :  { %v350_v51 = vpop.eup %349 }
 0x3d2   :  { %v272_v52 = vmul.f32 %v350_v51, %v346_v46 }
 0x3d4   :  { %275 = vst.msk [vmem:[%s450_s7 + $0x8] sm:$0xff] %vm273_vm3, %v272_v52 }

</bundles_post_ra>
